<compile_context>
chip_gen: v5e
topology: v5e:2x2
jax: 0.10.0
libtpu: 0.0.40
codegen_flags: <defaults>
</compile_context>

<pallas_src>
import math
import functools

import jax
import jax.numpy as jnp
from jax.experimental import pallas as pl
from jax.experimental.pallas import tpu as pltpu


def _round_up(x, m):
    return (x + m - 1) // m * m


def _gelu_exact(x):
    # Matches torch's erf-based GELU: 0.5 * x * (1 + erf(x / sqrt(2)))
    return 0.5 * x * (1.0 + jax.lax.erf(x * (1.0 / math.sqrt(2.0))))


def ffn_kernel(x_ref, w1t_ref, b1_ref, w2t_ref, b2_ref, o_ref):
    # x_ref   : (tile_m, Ep) tile of token rows
    # w1t_ref : (Ep, Ep)     W1 transposed (y = x @ w1t + b1), native dtype
    # b1_ref  : (1, Ep)      f32
    # w2t_ref : (Ep, Ep)     W2 transposed, native dtype
    # b2_ref  : (1, Ep)      f32
    # Native-dtype MXU matmul with f32 accumulation (single bf16 pass when
    # weights/activations are bf16; no per-tile weight upcast).
    h = jnp.dot(x_ref[...], w1t_ref[...], preferred_element_type=jnp.float32)
    h = h + b1_ref[...].astype(jnp.float32)
    h = _gelu_exact(h)  # f32 elementwise (VPU + erf polynomial)
    # dropout: identity (eval mode)
    # TODO(synk): training-mode dropout would use pltpu.prng_seed /
    # pltpu.prng_random_bits to build a keep-mask here.
    h = h.astype(w2t_ref.dtype)  # match MXU operand dtype (no-op when f32)
    y = jnp.dot(h, w2t_ref[...], preferred_element_type=jnp.float32)
    y = y + b2_ref[...].astype(jnp.float32)
    o_ref[...] = y.astype(o_ref.dtype)
    # TODO(synk): for very large E (esp. v7x's 64 MiB VMEM) add a grid axis
    # over the hidden/output-column dimension so only (Ep, tile_n) weight
    # slabs are resident instead of the full (Ep, Ep) weights.


def prepare_ffn_params(w1, b1, w2, b2, *, param_dtype=None):
    """Transpose, zero-pad to a lane-dense (multiple-of-128) embed dim, and
    cast the Linear weights ONCE, outside the jitted per-call path.

    For bf16 serving pass param_dtype=jnp.bfloat16 (halves weight DMA bytes
    and resident weight VMEM); biases always stay f32.
    """
    E = w1.shape[0]
    Ep = _round_up(E, 128)
    if param_dtype is None:
        param_dtype = w1.dtype

    def _pad_wt(w):  # (E, E) torch-Linear weight -> (Ep, Ep), transposed
        return jnp.zeros((Ep, Ep), param_dtype).at[:E, :E].set(
            w.T.astype(param_dtype))

    def _pad_b(b):
        return jnp.zeros((1, Ep), jnp.float32).at[0, :E].set(
            b.astype(jnp.float32))

    return {"w1t": _pad_wt(w1), "b1": _pad_b(b1),
            "w2t": _pad_wt(w2), "b2": _pad_b(b2), "embed_dim": E}


@functools.partial(jax.jit, static_argnames=("tile_m", "single_buffer_weights"))
def _ffn_forward(x, w1t, b1, w2t, b2, *, tile_m, single_buffer_weights):
    N, S, E = x.shape
    M = N * S
    Ep = w1t.shape[0]
    Mp = _round_up(M, tile_m)

    # Zero-pad rows / lanes: padded columns stay exactly zero through both
    # matmuls (padded weight rows/cols and biases are zero); padded rows and
    # columns are sliced off at the end.
    xp = jnp.zeros((Mp, Ep), x.dtype).at[:M, :E].set(x.reshape(M, E))

    grid = (Mp // tile_m,)

    weight_kwargs = {}
    if single_buffer_weights:
        # Constant index_map across the grid -> one resident copy suffices.
        weight_kwargs = dict(pipeline_mode=pl.Buffered(1))
    w_spec = pl.BlockSpec((Ep, Ep), lambda i: (0, 0), **weight_kwargs)
    b_spec = pl.BlockSpec((1, Ep), lambda i: (0, 0), **weight_kwargs)
    x_spec = pl.BlockSpec((tile_m, Ep), lambda i: (i, 0))
    o_spec = pl.BlockSpec((tile_m, Ep), lambda i: (i, 0))

    # Size scoped VMEM from the actual resident buffers (+ headroom).
    w_item = jnp.dtype(w1t.dtype).itemsize
    x_item = jnp.dtype(x.dtype).itemsize
    w_bufs = 1 if single_buffer_weights else 2
    vmem_bytes = (
        w_bufs * (2 * Ep * Ep * w_item + 2 * Ep * 4)   # resident weights + biases
        + 2 * 2 * tile_m * Ep * x_item                 # double-buffered x / out tiles
        + 2 * tile_m * Ep * 4                          # f32 hidden / spill headroom
        + (2 << 20)                                    # misc scratch headroom
    )
    vmem_limit = max(16 << 20, min(int(vmem_bytes), 64 << 20))

    outp = pl.pallas_call(
        ffn_kernel,
        out_shape=jax.ShapeDtypeStruct((Mp, Ep), x.dtype),
        grid_spec=pltpu.PrefetchScalarGridSpec(
            num_scalar_prefetch=0,
            grid=grid,
            in_specs=[x_spec, w_spec, b_spec, w_spec, b_spec],
            out_specs=o_spec,
        ),
        compiler_params=pltpu.CompilerParams(
            dimension_semantics=("parallel",),  # M-tiles shard across TCs (v7x)
            vmem_limit_bytes=vmem_limit,
        ),
    )(xp, w1t, b1, w2t, b2)

    return outp[:M, :E].reshape(N, S, E)


# Lazily probed: does this JAX build accept pipeline_mode=pl.Buffered(1)?
_SINGLE_BUFFER_OK = None


def feed_forward(x, params, *, tile_m=None):
    """x: (N, S, E); params: output of prepare_ffn_params."""
    global _SINGLE_BUFFER_OK
    N, S, E = x.shape
    assert E == params["embed_dim"], (E, params["embed_dim"])
    M = N * S
    if tile_m is None:
        # 512 = 2x the v6e/v7x MXU edge; amortizes per-grid-step overhead.
        # (On v7x, shapes that give an even grid of >= 2 steps feed both TCs.)
        tile_m = 512 if M > 512 else _round_up(M, 8)

    args = (x, params["w1t"], params["b1"], params["w2t"], params["b2"])
    if _SINGLE_BUFFER_OK is not False:
        try:
            out = _ffn_forward(*args, tile_m=tile_m, single_buffer_weights=True)
            if _SINGLE_BUFFER_OK is None:
                out = jax.block_until_ready(out)
            _SINGLE_BUFFER_OK = True
            return out
        except Exception:
            _SINGLE_BUFFER_OK = False
    return _ffn_forward(*args, tile_m=tile_m, single_buffer_weights=False)


def feed_forward_ref(x, w1, b1, w2, b2):
    """Pure-JAX reference mirroring the PyTorch forward (eval mode)."""
    N, S, E = x.shape
    h = x.reshape(N * S, E) @ w1.T + b1
    h = _gelu_exact(h)
    y = h @ w2.T + b2
    return y.reshape(N, S, E)


if __name__ == "__main__":
    key = jax.random.PRNGKey(0)
    k_x, k_w1, k_b1, k_w2, k_b2, k_x2 = jax.random.split(key, 6)

    N, S, E = 2, 8, 32  # batch, seq_len, embed_dim

    x = jax.random.normal(k_x, (N, S, E), dtype=jnp.float32)

    # Deterministic "Linear" parameter init (uniform, like torch's default).
    bound = 1.0 / math.sqrt(E)
    w1 = jax.random.uniform(k_w1, (E, E), jnp.float32, -bound, bound)
    b1 = jax.random.uniform(k_b1, (E,), jnp.float32, -bound, bound)
    w2 = jax.random.uniform(k_w2, (E, E), jnp.float32, -bound, bound)
    b2 = jax.random.uniform(k_b2, (E,), jnp.float32, -bound, bound)

    # One-time weight prep (transpose + pad + cast) outside the hot path.
    params = prepare_ffn_params(w1, b1, w2, b2)  # f32 params for exact check

    out = feed_forward(x, params)
    out = jax.block_until_ready(out)
    ref = feed_forward_ref(x, w1, b1, w2, b2)
    assert out.shape == (N, S, E), out.shape
    assert jnp.allclose(out, ref, atol=2e-5, rtol=2e-5), (
        float(jnp.max(jnp.abs(out - ref))))

    # Ragged M (N*S not a multiple of 8) exercises the padded-tail path.
    N2, S2 = 3, 5
    x2 = jax.random.normal(k_x2, (N2, S2, E), dtype=jnp.float32)
    out2 = jax.block_until_ready(feed_forward(x2, params))
    ref2 = feed_forward_ref(x2, w1, b1, w2, b2)
    assert out2.shape == (N2, S2, E), out2.shape
    assert jnp.allclose(out2, ref2, atol=2e-5, rtol=2e-5), (
        float(jnp.max(jnp.abs(out2 - ref2))))

    print("KERNEL_OK")
</pallas_src>

<mosaic_0001>
module attributes {stable_mosaic.version = 11 : i64} {
  func.func @ffn_kernel(%arg0: i32, %arg1: memref<16x128xf32, #tpu.memory_space<vmem>>, %arg2: memref<128x128xf32, #tpu.memory_space<vmem>>, %arg3: memref<1x128xf32, #tpu.memory_space<vmem>>, %arg4: memref<128x128xf32, #tpu.memory_space<vmem>>, %arg5: memref<1x128xf32, #tpu.memory_space<vmem>>, %arg6: memref<16x128xf32, #tpu.memory_space<vmem>>) attributes {dimension_semantics = [#tpu.dimension_semantics<parallel>], iteration_bounds = array<i64: 1>, scalar_prefetch = 0 : i64, scratch_operands = 0 : i64, tpu.core_type = #tpu.core_type<tc>, window_params = [{transform_indices = @transform_0, window_bounds = array<i64: 16, 128>}, {pipeline_mode = #tpu.pipeline_mode<synchronous>, transform_indices = @transform_1, window_bounds = array<i64: 128, 128>}, {pipeline_mode = #tpu.pipeline_mode<synchronous>, transform_indices = @transform_2, window_bounds = array<i64: 1, 128>}, {pipeline_mode = #tpu.pipeline_mode<synchronous>, transform_indices = @transform_3, window_bounds = array<i64: 128, 128>}, {pipeline_mode = #tpu.pipeline_mode<synchronous>, transform_indices = @transform_4, window_bounds = array<i64: 1, 128>}, {transform_indices = @transform_5, window_bounds = array<i64: 16, 128>}]} {
    %c0 = arith.constant 0 : index
    %c0_0 = arith.constant 0 : index
    %0 = vector.load %arg1[%c0, %c0_0] : memref<16x128xf32, #tpu.memory_space<vmem>>, vector<16x128xf32>
    %c0_1 = arith.constant 0 : index
    %c0_2 = arith.constant 0 : index
    %1 = vector.load %arg2[%c0_1, %c0_2] : memref<128x128xf32, #tpu.memory_space<vmem>>, vector<128x128xf32>
    %cst = arith.constant dense<0.000000e+00> : vector<16x128xf32>
    %2 = tpu.matmul %0, %1, %cst {dimension_numbers = #tpu.dot_dimension_numbers<[1], [0], [0], [1], [0, 0, 1, 1], [], []>} : vector<16x128xf32>, vector<128x128xf32>, vector<16x128xf32> -> vector<16x128xf32>
    %c0_3 = arith.constant 0 : index
    %c0_4 = arith.constant 0 : index
    %3 = vector.load %arg3[%c0_3, %c0_4] : memref<1x128xf32, #tpu.memory_space<vmem>>, vector<1x128xf32>
    %4 = vector.broadcast %3 : vector<1x128xf32> to vector<16x128xf32>
    %5 = arith.addf %2, %4 : vector<16x128xf32>
    %cst_5 = arith.constant 5.000000e-01 : f32
    %6 = vector.broadcast %cst_5 : f32 to vector<16x128xf32>
    %7 = arith.mulf %6, %5 : vector<16x128xf32>
    %cst_6 = arith.constant 0.707106769 : f32
    %8 = vector.broadcast %cst_6 : f32 to vector<16x128xf32>
    %9 = arith.mulf %5, %8 : vector<16x128xf32>
    %10 = math.erf %9 : vector<16x128xf32>
    %cst_7 = arith.constant 1.000000e+00 : f32
    %11 = vector.broadcast %cst_7 : f32 to vector<16x128xf32>
    %12 = arith.addf %11, %10 : vector<16x128xf32>
    %13 = arith.mulf %7, %12 : vector<16x128xf32>
    %c0_8 = arith.constant 0 : index
    %c0_9 = arith.constant 0 : index
    %14 = vector.load %arg4[%c0_8, %c0_9] : memref<128x128xf32, #tpu.memory_space<vmem>>, vector<128x128xf32>
    %cst_10 = arith.constant dense<0.000000e+00> : vector<16x128xf32>
    %15 = tpu.matmul %13, %14, %cst_10 {dimension_numbers = #tpu.dot_dimension_numbers<[1], [0], [0], [1], [0, 0, 1, 1], [], []>} : vector<16x128xf32>, vector<128x128xf32>, vector<16x128xf32> -> vector<16x128xf32>
    %c0_11 = arith.constant 0 : index
    %c0_12 = arith.constant 0 : index
    %16 = vector.load %arg5[%c0_11, %c0_12] : memref<1x128xf32, #tpu.memory_space<vmem>>, vector<1x128xf32>
    %17 = vector.broadcast %16 : vector<1x128xf32> to vector<16x128xf32>
    %18 = arith.addf %15, %17 : vector<16x128xf32>
    %c0_13 = arith.constant 0 : index
    %c0_14 = arith.constant 0 : index
    %19 = vector.load %arg6[%c0_13, %c0_14] : memref<16x128xf32, #tpu.memory_space<vmem>>, vector<16x128xf32>
    tpu.vector_store %arg6[%c0_13, %c0_14], %18 {strides = array<i32>} : memref<16x128xf32, #tpu.memory_space<vmem>>, vector<16x128xf32>,
    return
  }
  func.func @transform_0(%arg0: i32) -> (i32, i32) {
    %c0_i32 = arith.constant 0 : i32
    %c0_i32_0 = arith.constant 0 : i32
    return %arg0, %c0_i32 : i32, i32
  }
  func.func @transform_1(%arg0: i32) -> (i32, i32) {
    %c0_i32 = arith.constant 0 : i32
    %c0_i32_0 = arith.constant 0 : i32
    %c0_i32_1 = arith.constant 0 : i32
    return %c0_i32, %c0_i32_0 : i32, i32
  }
  func.func @transform_2(%arg0: i32) -> (i32, i32) {
    %c0_i32 = arith.constant 0 : i32
    %c0_i32_0 = arith.constant 0 : i32
    %c0_i32_1 = arith.constant 0 : i32
    return %c0_i32, %c0_i32_0 : i32, i32
  }
  func.func @transform_3(%arg0: i32) -> (i32, i32) {
    %c0_i32 = arith.constant 0 : i32
    %c0_i32_0 = arith.constant 0 : i32
    %c0_i32_1 = arith.constant 0 : i32
    return %c0_i32, %c0_i32_0 : i32, i32
  }
  func.func @transform_4(%arg0: i32) -> (i32, i32) {
    %c0_i32 = arith.constant 0 : i32
    %c0_i32_0 = arith.constant 0 : i32
    %c0_i32_1 = arith.constant 0 : i32
    return %c0_i32, %c0_i32_0 : i32, i32
  }
  func.func @transform_5(%arg0: i32) -> (i32, i32) {
    %c0_i32 = arith.constant 0 : i32
    %c0_i32_0 = arith.constant 0 : i32
    return %arg0, %c0_i32 : i32, i32
  }
}

module attributes {stable_mosaic.version = 11 : i64} {
  func.func @ffn_kernel(%arg0: i32, %arg1: memref<16x128xf32, #tpu.memory_space<vmem>>, %arg2: memref<128x128xf32, #tpu.memory_space<vmem>>, %arg3: memref<1x128xf32, #tpu.memory_space<vmem>>, %arg4: memref<128x128xf32, #tpu.memory_space<vmem>>, %arg5: memref<1x128xf32, #tpu.memory_space<vmem>>, %arg6: memref<16x128xf32, #tpu.memory_space<vmem>>) attributes {dimension_semantics = [#tpu.dimension_semantics<parallel>], iteration_bounds = array<i64: 1>, scalar_prefetch = 0 : i64, scratch_operands = 0 : i64, tpu.core_type = #tpu.core_type<tc>, window_params = [{transform_indices = @transform_0, window_bounds = array<i64: 16, 128>}, {pipeline_mode = #tpu.pipeline_mode<synchronous>, transform_indices = @transform_1, window_bounds = array<i64: 128, 128>}, {pipeline_mode = #tpu.pipeline_mode<synchronous>, transform_indices = @transform_2, window_bounds = array<i64: 1, 128>}, {pipeline_mode = #tpu.pipeline_mode<synchronous>, transform_indices = @transform_3, window_bounds = array<i64: 128, 128>}, {pipeline_mode = #tpu.pipeline_mode<synchronous>, transform_indices = @transform_4, window_bounds = array<i64: 1, 128>}, {transform_indices = @transform_5, window_bounds = array<i64: 16, 128>}]} {
    %c0 = arith.constant 0 : index
    %c0_0 = arith.constant 0 : index
    %0 = vector.load %arg1[%c0, %c0_0] : memref<16x128xf32, #tpu.memory_space<vmem>>, vector<16x128xf32>
    %c0_1 = arith.constant 0 : index
    %c0_2 = arith.constant 0 : index
    %1 = vector.load %arg2[%c0_1, %c0_2] : memref<128x128xf32, #tpu.memory_space<vmem>>, vector<128x128xf32>
    %cst = arith.constant dense<0.000000e+00> : vector<16x128xf32>
    %2 = tpu.matmul %0, %1, %cst {dimension_numbers = #tpu.dot_dimension_numbers<[1], [0], [0], [1], [0, 0, 1, 1], [], []>} : vector<16x128xf32>, vector<128x128xf32>, vector<16x128xf32> -> vector<16x128xf32>
    %c0_3 = arith.constant 0 : index
    %c0_4 = arith.constant 0 : index
    %3 = vector.load %arg3[%c0_3, %c0_4] : memref<1x128xf32, #tpu.memory_space<vmem>>, vector<1x128xf32>
    %4 = vector.broadcast %3 : vector<1x128xf32> to vector<16x128xf32>
    %5 = arith.addf %2, %4 : vector<16x128xf32>
    %cst_5 = arith.constant 5.000000e-01 : f32
    %6 = vector.broadcast %cst_5 : f32 to vector<16x128xf32>
    %7 = arith.mulf %6, %5 : vector<16x128xf32>
    %cst_6 = arith.constant 0.707106769 : f32
    %8 = vector.broadcast %cst_6 : f32 to vector<16x128xf32>
    %9 = arith.mulf %5, %8 : vector<16x128xf32>
    %10 = math.erf %9 : vector<16x128xf32>
    %cst_7 = arith.constant 1.000000e+00 : f32
    %11 = vector.broadcast %cst_7 : f32 to vector<16x128xf32>
    %12 = arith.addf %11, %10 : vector<16x128xf32>
    %13 = arith.mulf %7, %12 : vector<16x128xf32>
    %c0_8 = arith.constant 0 : index
    %c0_9 = arith.constant 0 : index
    %14 = vector.load %arg4[%c0_8, %c0_9] : memref<128x128xf32, #tpu.memory_space<vmem>>, vector<128x128xf32>
    %cst_10 = arith.constant dense<0.000000e+00> : vector<16x128xf32>
    %15 = tpu.matmul %13, %14, %cst_10 {dimension_numbers = #tpu.dot_dimension_numbers<[1], [0], [0], [1], [0, 0, 1, 1], [], []>} : vector<16x128xf32>, vector<128x128xf32>, vector<16x128xf32> -> vector<16x128xf32>
    %c0_11 = arith.constant 0 : index
    %c0_12 = arith.constant 0 : index
    %16 = vector.load %arg5[%c0_11, %c0_12] : memref<1x128xf32, #tpu.memory_space<vmem>>, vector<1x128xf32>
    %17 = vector.broadcast %16 : vector<1x128xf32> to vector<16x128xf32>
    %18 = arith.addf %15, %17 : vector<16x128xf32>
    %c0_13 = arith.constant 0 : index
    %c0_14 = arith.constant 0 : index
    %19 = vector.load %arg6[%c0_13, %c0_14] : memref<16x128xf32, #tpu.memory_space<vmem>>, vector<16x128xf32>
    tpu.vector_store %arg6[%c0_13, %c0_14], %18 {strides = array<i32>} : memref<16x128xf32, #tpu.memory_space<vmem>>, vector<16x128xf32>,
    return
  }
  func.func @transform_0(%arg0: i32) -> (i32, i32) {
    %c0_i32 = arith.constant 0 : i32
    %c0_i32_0 = arith.constant 0 : i32
    return %arg0, %c0_i32 : i32, i32
  }
  func.func @transform_1(%arg0: i32) -> (i32, i32) {
    %c0_i32 = arith.constant 0 : i32
    %c0_i32_0 = arith.constant 0 : i32
    %c0_i32_1 = arith.constant 0 : i32
    return %c0_i32, %c0_i32_0 : i32, i32
  }
  func.func @transform_2(%arg0: i32) -> (i32, i32) {
    %c0_i32 = arith.constant 0 : i32
    %c0_i32_0 = arith.constant 0 : i32
    %c0_i32_1 = arith.constant 0 : i32
    return %c0_i32, %c0_i32_0 : i32, i32
  }
  func.func @transform_3(%arg0: i32) -> (i32, i32) {
    %c0_i32 = arith.constant 0 : i32
    %c0_i32_0 = arith.constant 0 : i32
    %c0_i32_1 = arith.constant 0 : i32
    return %c0_i32, %c0_i32_0 : i32, i32
  }
  func.func @transform_4(%arg0: i32) -> (i32, i32) {
    %c0_i32 = arith.constant 0 : i32
    %c0_i32_0 = arith.constant 0 : i32
    %c0_i32_1 = arith.constant 0 : i32
    return %c0_i32, %c0_i32_0 : i32, i32
  }
  func.func @transform_5(%arg0: i32) -> (i32, i32) {
    %c0_i32 = arith.constant 0 : i32
    %c0_i32_0 = arith.constant 0 : i32
    return %arg0, %c0_i32 : i32, i32
  }
}

</mosaic_0001>

<bundles_post_ra>
// kernel: _ffn_forward.1
= control target key start
LH: loop header
LB: loop body
LE: loop exit
PB: predicated region body
PF: predicated region fallthrough
CT: control target
= control target key end

     0   :  { %10 = vsyncpa [#allocation3], 0  ;;  %s420_s0 = inlined_call_operand.vmem [shape: f32[16,128], index: 0, kind: input, shape index: {}]   ;;  %s421_s1 = inlined_call_operand.hbm [shape: f32[128,128], index: 1, kind: input, shape index: {}]   ;;  %s422_s2 = inlined_call_operand.vmem [shape: f32[1,128], index: 2, kind: input, shape index: {}]   ;;  %s423_s3 = inlined_call_operand.hbm [shape: f32[128,128], index: 3, kind: input, shape index: {}]   ;;  %s424_s4 = inlined_call_operand.vmem [shape: f32[1,128], index: 4, kind: input, shape index: {}]   ;;  %s425_s5 = inlined_call_operand.vmem [shape: f32[16,128], index: 5, kind: output, shape index: {}]  }
   0x1   :  { %s18_s20 = sshll.u32 %s421_s1, 4  ;;  %s19_s20 = int_to_ptr.hbm [resolvable:$true] %s18_s20 }
   0x2   :  { %11 = vsyncpa [#allocation5], 0  ;;  %s332_s21 = smov [#allocation2]   ;;  %s33_s25 = sshll.u32 %s423_s3, 4  ;;  %s34_s25 = int_to_ptr.hbm [resolvable:$true] %s33_s25 }
   0x3   :  { %s20_s22 = sshll.u32 %s332_s21, 4  ;;  %s333_s26 = smov 128   ;;  %s21_s22 = int_to_ptr.vmem [resolvable:$true] %s20_s22 }
   0x4   :  { %s334_s27 = smov 8   ;;  %s335_s28 = smov [#allocation4]  }
   0x5   :  { %26 = dma.hbm_to_vmem [thread:$0]  %s19_s20, 2048, %s21_s22, [#allocation3], %s333_s26, %s333_s26, %s334_s27  }
   0x6   :  { %s35_s29 = sshll.u32 %s335_s28, 4  ;;  %s36_s29 = int_to_ptr.vmem [resolvable:$true] %s35_s29 }
   0x7   :  { %41 = dma.hbm_to_vmem [thread:$0]  %s34_s25, 2048, %s36_s29, [#allocation5], %s333_s26, %s333_s26, %s334_s27  }
   0x8   :  { %328 = dma.done.wait [#allocation3], 2048  }
   0x9   :  { %329 = vsyncadd [#allocation3], 4294965248 }
   0xa   :  { %330 = dma.done.wait [#allocation5], 2048  }
   0xb   :  { %331 = vsyncadd [#allocation5], 4294965248  ;;  %v69_v0 = vld [vmem:[#allocation2 + $0x78] sm:$0xff]  ;;  %v68_v1 = vld [vmem:[#allocation2 + $0x70] sm:$0xff] }
   0xc   :  { %74 = vmatpush.msra.mxu0 %v69_v0  ;;  %238 = vmatpush.msra.mxu2 %v69_v0  ;;  %v67_v2 = vld [vmem:[#allocation2 + $0x68] sm:$0xff]  ;;  %v66_v3 = vld [vmem:[#allocation2 + $0x60] sm:$0xff]  ;;  %v65_v4 = vld [vmem:[#allocation2 + $0x58] sm:$0xff] }
   0xd   :  { %v64_v5 = vld [vmem:[#allocation2 + $0x50] sm:$0xff]  ;;  %v63_v6 = vld [vmem:[#allocation2 + $0x48] sm:$0xff]  ;;  %v62_v7 = vld [vmem:[#allocation2 + $0x40] sm:$0xff] }
   0xe   :  { %75 = vmatpush.msra.mxu0 %v68_v1  ;;  %239 = vmatpush.msra.mxu2 %v68_v1  ;;  %v61_v8 = vld [vmem:[#allocation2 + $0x38] sm:$0xff]  ;;  %v60_v9 = vld [vmem:[#allocation2 + $0x30] sm:$0xff]  ;;  %v59_v10 = vld [vmem:[#allocation2 + $0x28] sm:$0xff] }
   0xf   :  { %v58_v11 = vld [vmem:[#allocation2 + $0x20] sm:$0xff]  ;;  %v57_v12 = vld [vmem:[#allocation2 + $0x18] sm:$0xff]  ;;  %v56_v13 = vld [vmem:[#allocation2 + $0x10] sm:$0xff] }
  0x10   :  { %76 = vmatpush.msra.mxu0 %v67_v2  ;;  %240 = vmatpush.msra.mxu2 %v67_v2  ;;  %v55_v14 = vld [vmem:[#allocation2 + $0x8] sm:$0xff]  ;;  %v54_v15 = vld [vmem:[#allocation2] sm:$0xff]  ;;  %v200_v18 = vld [vmem:[#allocation4 + $0x78] sm:$0xff] }
  0x11   :  { %v52_v16 = vld [vmem:[%s420_s0] sm:$0xff]  ;;  %v53_v17 = vld [vmem:[%s420_s0 + $0x8] sm:$0xff]  ;;  %205 = vmatpush.msra.mxu1 %v200_v18  ;;  %254 = vmatpush.msra.mxu3 %v200_v18  ;;  %v199_v19 = vld [vmem:[#allocation4 + $0x70] sm:$0xff] }
  0x12   :  { %77 = vmatpush.msra.mxu0 %v66_v3  ;;  %241 = vmatpush.msra.mxu2 %v66_v3  ;;  %v198_v20 = vld [vmem:[#allocation4 + $0x68] sm:$0xff]  ;;  %v197_v21 = vld [vmem:[#allocation4 + $0x60] sm:$0xff]  ;;  %v196_v23 = vld [vmem:[#allocation4 + $0x58] sm:$0xff] }
  0x13   :  { %206 = vmatpush.msra.mxu1 %v199_v19  ;;  %255 = vmatpush.msra.mxu3 %v199_v19  ;;  %v274_v22 = vld [vmem:[%s422_s2] ss:$0 sm:$0xff]  ;;  %v195_v25 = vld [vmem:[#allocation4 + $0x50] sm:$0xff]  ;;  %v194_v27 = vld [vmem:[#allocation4 + $0x48] sm:$0xff] }
  0x14   :  { %78 = vmatpush.msra.mxu0 %v65_v4  ;;  %242 = vmatpush.msra.mxu2 %v65_v4  ;;  %v193_v29 = vld [vmem:[#allocation4 + $0x40] sm:$0xff]  ;;  %v192_v30 = vld [vmem:[#allocation4 + $0x38] sm:$0xff]  ;;  %v191_v33 = vld [vmem:[#allocation4 + $0x30] sm:$0xff] }
  0x15   :  { %207 = vmatpush.msra.mxu1 %v198_v20  ;;  %256 = vmatpush.msra.mxu3 %v198_v20  ;;  %v190_v36 = vld [vmem:[#allocation4 + $0x28] sm:$0xff]  ;;  %v189_v39 = vld [vmem:[#allocation4 + $0x20] sm:$0xff]  ;;  %v188_v43 = vld [vmem:[#allocation4 + $0x18] sm:$0xff] }
  0x16   :  { %79 = vmatpush.msra.mxu0 %v64_v5  ;;  %243 = vmatpush.msra.mxu2 %v64_v5  ;;  %v187_v47 = vld [vmem:[#allocation4 + $0x10] sm:$0xff]  ;;  %v186_v52 = vld [vmem:[#allocation4 + $0x8] sm:$0xff]  ;;  %v185_v56 = vld [vmem:[#allocation4] sm:$0xff] }
  0x17   :  { %208 = vmatpush.msra.mxu1 %v197_v21  ;;  %257 = vmatpush.msra.mxu3 %v197_v21 }
  0x18   :  { %80 = vmatpush.msra.mxu0 %v63_v6  ;;  %244 = vmatpush.msra.mxu2 %v63_v6 }
  0x19   :  { %209 = vmatpush.msra.mxu1 %v196_v23  ;;  %258 = vmatpush.msra.mxu3 %v196_v23 }
  0x1a   :  { %81 = vmatpush.msra.mxu0 %v62_v7  ;;  %245 = vmatpush.msra.mxu2 %v62_v7 }
  0x1b   :  { %210 = vmatpush.msra.mxu1 %v195_v25  ;;  %259 = vmatpush.msra.mxu3 %v195_v25 }
  0x1c   :  { %82 = vmatpush.msra.mxu0 %v61_v8  ;;  %246 = vmatpush.msra.mxu2 %v61_v8 }
  0x1d   :  { %211 = vmatpush.msra.mxu1 %v194_v27  ;;  %260 = vmatpush.msra.mxu3 %v194_v27 }
  0x1e   :  { %83 = vmatpush.msra.mxu0 %v60_v9  ;;  %247 = vmatpush.msra.mxu2 %v60_v9 }
  0x1f   :  { %212 = vmatpush.msra.mxu1 %v193_v29  ;;  %261 = vmatpush.msra.mxu3 %v193_v29 }
  0x20   :  { %84 = vmatpush.msra.mxu0 %v59_v10  ;;  %248 = vmatpush.msra.mxu2 %v59_v10 }
  0x21   :  { %213 = vmatpush.msra.mxu1 %v192_v30  ;;  %262 = vmatpush.msra.mxu3 %v192_v30 }
  0x22   :  { %85 = vmatpush.msra.mxu0 %v58_v11  ;;  %249 = vmatpush.msra.mxu2 %v58_v11 }
  0x23   :  { %214 = vmatpush.msra.mxu1 %v191_v33  ;;  %263 = vmatpush.msra.mxu3 %v191_v33 }
  0x24   :  { %86 = vmatpush.msra.mxu0 %v57_v12  ;;  %250 = vmatpush.msra.mxu2 %v57_v12 }
  0x25   :  { %215 = vmatpush.msra.mxu1 %v190_v36  ;;  %264 = vmatpush.msra.mxu3 %v190_v36 }
  0x26   :  { %87 = vmatpush.msra.mxu0 %v56_v13  ;;  %251 = vmatpush.msra.mxu2 %v56_v13 }
  0x27   :  { %216 = vmatpush.msra.mxu1 %v189_v39  ;;  %265 = vmatpush.msra.mxu3 %v189_v39 }
  0x28   :  { %88 = vmatpush.msra.mxu0 %v55_v14  ;;  %252 = vmatpush.msra.mxu2 %v55_v14 }
  0x29   :  { %217 = vmatpush.msra.mxu1 %v188_v43  ;;  %266 = vmatpush.msra.mxu3 %v188_v43 }
  0x2a   :  { %89 = vmatpush.msra.mxu0 %v54_v15  ;;  %253 = vmatpush.msra.mxu2 %v54_v15 }
  0x2b   :  { %90 = vmatmul.f32.vlgmr.msra.gmra.mxu0 %v52_v16  ;;  %93 = vmatmul.f32.vlgmr.msra.gmra.mxu2 %v53_v17 }
  0x2c   :  { %218 = vmatpush.msra.mxu1 %v187_v47  ;;  %267 = vmatpush.msra.mxu3 %v187_v47 }
  0x2e   :  { %219 = vmatpush.msra.mxu1 %v186_v52  ;;  %268 = vmatpush.msra.mxu3 %v186_v52 }
  0x30   :  { %220 = vmatpush.msra.mxu1 %v185_v56  ;;  %269 = vmatpush.msra.mxu3 %v185_v56  ;;  %v275_v56 = vld [vmem:[%s424_s4] ss:$0 sm:$0xff] }
  0xa8   :  { %v91_v24 = vpop.f32.mrf.mxu0 }
  0xa9   :  { %v381_v26 = vadd.f32 %v274_v22, %v91_v24 }
  0xab   :  { %v384_v28 = vmul.f32 0.70710677, %v381_v26  ;;  %v97_v47 = vmul.f32 0.5, %v381_v26 }
  0xad   :  { %v101_v31 = vmul.f32 %v384_v28, %v384_v28 }
  0xae   :  { %v94_v32 = vpop.f32.mrf.mxu2 }
  0xaf   :  { %v388_v34 = vmin.f32 %v101_v31, 16.0  ;;  %v390_v35 = vadd.f32 %v274_v22, %v94_v32 }
  0xb1   :  { %v103_v37 = vmul.f32 2.1237322e-06, %v388_v34  ;;  %v394_v38 = vmul.f32 0.70710677, %v390_v35  ;;  %v114_v40 = vmul.f32 3.8918573e-05, %v388_v34 }
  0xb3   :  { %v104_v41 = vadd.f32 0.00028619796, %v103_v37  ;;  %v141_v42 = vmul.f32 %v394_v38, %v394_v38  ;;  %v115_v44 = vadd.f32 0.001143296, %v114_v40 }
  0xb5   :  { %v105_v45 = vmul.f32 %v104_v41, %v388_v34  ;;  %v142_v46 = vmin.f32 %v141_v42, 16.0  ;;  %v116_v48 = vmul.f32 %v115_v44, %v388_v34 }
  0xb7   :  { %v143_v49 = vmul.f32 2.1237322e-06, %v142_v46  ;;  %v154_v50 = vmul.f32 3.8918573e-05, %v142_v46  ;;  %v106_v51 = vadd.f32 0.0036580483, %v105_v45 }
  0xb8   :  { %v117_v53 = vadd.f32 0.014752088, %v116_v48 }
  0xb9   :  { %v144_v54 = vadd.f32 0.00028619796, %v143_v49  ;;  %v155_v55 = vadd.f32 0.001143296, %v154_v50  ;;  %v107_v60 = vmul.f32 %v106_v51, %v388_v34 }
  0xba   :  { %v118_v57 = vmul.f32 %v117_v53, %v388_v34  ;;  %v98_v53 = vmul.f32 0.5, %v390_v35 }
  0xbb   :  { %v145_v58 = vmul.f32 %v144_v54, %v142_v46  ;;  %v156_v59 = vmul.f32 %v155_v55, %v142_v46  ;;  %v108_v2 = vadd.f32 0.05243302, %v107_v60 }
  0xbc   :  { %v119_v61 = vadd.f32 0.112945676, %v118_v57 }
  0xbd   :  { %v146_v62 = vadd.f32 0.0036580483, %v145_v58  ;;  %v157_v63 = vadd.f32 0.014752088, %v156_v59  ;;  %v109_v8 = vmul.f32 %v108_v2, %v388_v34 }
  0xbe   :  { %v120_v0 = vmul.f32 %v119_v61, %v388_v34 }
  0xbf   :  { %v158_v1 = vmul.f32 %v157_v63, %v142_v46  ;;  %v147_v4 = vmul.f32 %v146_v62, %v142_v46  ;;  %v110_v13 = vadd.f32 0.18741608, %v109_v8 }
  0xc0   :  { %v121_v3 = vadd.f32 0.4994258, %v120_v0 }
  0xc1   :  { %v159_v5 = vadd.f32 0.112945676, %v158_v1  ;;  %v148_v10 = vadd.f32 0.05243302, %v147_v4  ;;  %v111_v17 = vmul.f32 %v110_v13, %v388_v34 }
  0xc2   :  { %v122_v6 = vmul.f32 %v121_v3, %v388_v34 }
  0xc3   :  { %v160_v7 = vmul.f32 %v159_v5, %v142_v46  ;;  %v149_v14 = vmul.f32 %v148_v10, %v142_v46  ;;  %v112_v21 = vadd.f32 1.1283791, %v111_v17 }
  0xc4   :  { %v123_v9 = vadd.f32 1.0, %v122_v6 }
  0xc5   :  { %v161_v11 = vadd.f32 0.4994258, %v160_v7  ;;  %v150_v18 = vadd.f32 0.18741608, %v149_v14  ;;  %v113_v31 = vmul.f32 %v112_v21, %v384_v28 }
  0xc6   :  { %276 = vrcp.f32 %v123_v9  ;;  %v135_v22 = vand.u32 2147483648, %v123_v9  ;;  %v133_v27 = vand.u32 2147483647, %v123_v9  ;;  %vm129_vm1 = vweird.f32 %v123_v9 }
  0xc7   :  { %v162_v12 = vmul.f32 %v161_v11, %v142_v46  ;;  %v151_v24 = vmul.f32 %v150_v18, %v142_v46 }
  0xc8   :  { %v136_v32 = vor.u32 1.1754944e-38, %v135_v22  ;;  %vm134_vm3 = vcmp.eq.f32.partialorder %v133_v27, 8.507059e+37 }
  0xc9   :  { %v163_v15 = vadd.f32 1.0, %v162_v12  ;;  %v152_v36 = vadd.f32 1.1283791, %v151_v24 }
  0xcb   :  { %278 = vrcp.f32 %v163_v15  ;;  %v175_v37 = vand.u32 2147483648, %v163_v15  ;;  %v173_v41 = vand.u32 2147483647, %v163_v15  ;;  %vm169_vm5 = vweird.f32 %v163_v15 }
  0xcc   :  { %v277_v16 = vpop.eup %276  ;;  %v153_v46 = vmul.f32 %v152_v36, %v394_v38 }
  0xcd   :  { %v125_v19 = vmul.f32 %v277_v16, %v123_v9  ;;  %vm130_vm0 = vweird.f32 %v277_v16  ;;  %v176_v45 = vor.u32 1.1754944e-38, %v175_v37  ;;  %vm174_vm7 = vcmp.eq.f32.partialorder %v173_v41, 8.507059e+37 }
  0xce   :  { %vm131_vm2 = vmor %vm129_vm1, %vm130_vm0 }
  0xcf   :  { %v126_v20 = vsub.f32 1.0, %v125_v19 }
  0xd1   :  { %v279_v23 = vpop.eup %278  ;;  %v127_v25 = vmul.f32 %v277_v16, %v126_v20 }
  0xd2   :  { %v165_v29 = vmul.f32 %v279_v23, %v163_v15  ;;  %vm170_vm4 = vweird.f32 %v279_v23 }
  0xd3   :  { %v128_v30 = vadd.f32 %v277_v16, %v127_v25  ;;  %vm171_vm6 = vmor %vm169_vm5, %vm170_vm4 }
  0xd4   :  { %v166_v33 = vsub.f32 1.0, %v165_v29 }
  0xd5   :  { %v132_v34 = vsel %vm131_vm2, %v277_v16, %v128_v30 }
  0xd6   :  { %v137_v39 = vsel %vm134_vm3, %v136_v32, %v132_v34  ;;  %v167_v40 = vmul.f32 %v279_v23, %v166_v33 }
  0xd7   :  { %v138_v42 = vmul.f32 %v137_v39, %v113_v31 }
  0xd8   :  { %v168_v43 = vadd.f32 %v279_v23, %v167_v40 }
  0xd9   :  { %v236_v44 = vclamps-f32 %v138_v42, 1.0 }
  0xda   :  { %v172_v28 = vsel %vm171_vm6, %v279_v23, %v168_v43 }
  0xdb   :  { %v181_v48 = vadd.f32 1.0, %v236_v44  ;;  %v177_v49 = vsel %vm174_vm7, %v176_v45, %v172_v28 }
  0xdc   :  { %v178_v50 = vmul.f32 %v177_v49, %v153_v46 }
  0xdd   :  { %v183_v51 = vmul.f32 %v181_v48, %v97_v47 }
  0xde   :  { %v237_v52 = vclamps-f32 %v178_v50, 1.0 }
  0xdf   :  { %221 = vmatmul.f32.vlgmr.msra.gmra.mxu1 %v183_v51 }
  0xe0   :  { %v182_v54 = vadd.f32 1.0, %v237_v52 }
  0xe2   :  { %v184_v55 = vmul.f32 %v182_v54, %v98_v53 }
  0xe4   :  { %224 = vmatmul.f32.vlgmr.msra.gmra.mxu3 %v184_v55 }
 0x15c   :  { %v222_v38 = vpop.f32.mrf.mxu1 }
 0x15d   :  { %v223_v57 = vadd.f32 %v275_v56, %v222_v38 }
 0x15f   :  { %228 = vst [vmem:[%s425_s5] sm:$0xff] %v223_v57 }
 0x167   :  { %v225_v26 = vpop.f32.mrf.mxu3 }
 0x168   :  { %v226_v58 = vadd.f32 %v275_v56, %v225_v26 }
 0x16a   :  { %229 = vst [vmem:[%s425_s5 + $0x8] sm:$0xff] %v226_v58 }
 0x16b   :  { %234 = vsyncpa [#allocation3], 1 }
 0x16c   :  { %235 = vsyncpa [#allocation5], 1 }

// kernel: _ffn_forward.1
= control target key start
LH: loop header
LB: loop body
LE: loop exit
PB: predicated region body
PF: predicated region fallthrough
CT: control target
= control target key end

     0   :  { %10 = vsyncpa [#allocation3], 0  ;;  %s420_s0 = inlined_call_operand.vmem [shape: f32[16,128], index: 0, kind: input, shape index: {}]   ;;  %s421_s1 = inlined_call_operand.hbm [shape: f32[128,128], index: 1, kind: input, shape index: {}]   ;;  %s422_s2 = inlined_call_operand.vmem [shape: f32[1,128], index: 2, kind: input, shape index: {}]   ;;  %s423_s3 = inlined_call_operand.hbm [shape: f32[128,128], index: 3, kind: input, shape index: {}]   ;;  %s424_s4 = inlined_call_operand.vmem [shape: f32[1,128], index: 4, kind: input, shape index: {}]   ;;  %s425_s5 = inlined_call_operand.vmem [shape: f32[16,128], index: 5, kind: output, shape index: {}]  }
   0x1   :  { %s18_s20 = sshll.u32 %s421_s1, 4  ;;  %s19_s20 = int_to_ptr.hbm [resolvable:$true] %s18_s20 }
   0x2   :  { %11 = vsyncpa [#allocation5], 0  ;;  %s332_s21 = smov [#allocation2]   ;;  %s33_s25 = sshll.u32 %s423_s3, 4  ;;  %s34_s25 = int_to_ptr.hbm [resolvable:$true] %s33_s25 }
   0x3   :  { %s20_s22 = sshll.u32 %s332_s21, 4  ;;  %s333_s26 = smov 128   ;;  %s21_s22 = int_to_ptr.vmem [resolvable:$true] %s20_s22 }
   0x4   :  { %s334_s27 = smov 8   ;;  %s335_s28 = smov [#allocation4]  }
   0x5   :  { %26 = dma.hbm_to_vmem [thread:$0]  %s19_s20, 2048, %s21_s22, [#allocation3], %s333_s26, %s333_s26, %s334_s27  }
   0x6   :  { %s35_s29 = sshll.u32 %s335_s28, 4  ;;  %s36_s29 = int_to_ptr.vmem [resolvable:$true] %s35_s29 }
   0x7   :  { %41 = dma.hbm_to_vmem [thread:$0]  %s34_s25, 2048, %s36_s29, [#allocation5], %s333_s26, %s333_s26, %s334_s27  }
   0x8   :  { %328 = dma.done.wait [#allocation3], 2048  }
   0x9   :  { %329 = vsyncadd [#allocation3], 4294965248 }
   0xa   :  { %330 = dma.done.wait [#allocation5], 2048  }
   0xb   :  { %331 = vsyncadd [#allocation5], 4294965248  ;;  %v69_v0 = vld [vmem:[#allocation2 + $0x78] sm:$0xff]  ;;  %v68_v1 = vld [vmem:[#allocation2 + $0x70] sm:$0xff] }
   0xc   :  { %74 = vmatpush.msra.mxu0 %v69_v0  ;;  %238 = vmatpush.msra.mxu2 %v69_v0  ;;  %v67_v2 = vld [vmem:[#allocation2 + $0x68] sm:$0xff]  ;;  %v66_v3 = vld [vmem:[#allocation2 + $0x60] sm:$0xff]  ;;  %v65_v4 = vld [vmem:[#allocation2 + $0x58] sm:$0xff] }
   0xd   :  { %v64_v5 = vld [vmem:[#allocation2 + $0x50] sm:$0xff]  ;;  %v63_v6 = vld [vmem:[#allocation2 + $0x48] sm:$0xff]  ;;  %v62_v7 = vld [vmem:[#allocation2 + $0x40] sm:$0xff] }
   0xe   :  { %75 = vmatpush.msra.mxu0 %v68_v1  ;;  %239 = vmatpush.msra.mxu2 %v68_v1  ;;  %v61_v8 = vld [vmem:[#allocation2 + $0x38] sm:$0xff]  ;;  %v60_v9 = vld [vmem:[#allocation2 + $0x30] sm:$0xff]  ;;  %v59_v10 = vld [vmem:[#allocation2 + $0x28] sm:$0xff] }
   0xf   :  { %v58_v11 = vld [vmem:[#allocation2 + $0x20] sm:$0xff]  ;;  %v57_v12 = vld [vmem:[#allocation2 + $0x18] sm:$0xff]  ;;  %v56_v13 = vld [vmem:[#allocation2 + $0x10] sm:$0xff] }
  0x10   :  { %76 = vmatpush.msra.mxu0 %v67_v2  ;;  %240 = vmatpush.msra.mxu2 %v67_v2  ;;  %v55_v14 = vld [vmem:[#allocation2 + $0x8] sm:$0xff]  ;;  %v54_v15 = vld [vmem:[#allocation2] sm:$0xff]  ;;  %v200_v18 = vld [vmem:[#allocation4 + $0x78] sm:$0xff] }
  0x11   :  { %v52_v16 = vld [vmem:[%s420_s0] sm:$0xff]  ;;  %v53_v17 = vld [vmem:[%s420_s0 + $0x8] sm:$0xff]  ;;  %205 = vmatpush.msra.mxu1 %v200_v18  ;;  %254 = vmatpush.msra.mxu3 %v200_v18  ;;  %v199_v19 = vld [vmem:[#allocation4 + $0x70] sm:$0xff] }
  0x12   :  { %77 = vmatpush.msra.mxu0 %v66_v3  ;;  %241 = vmatpush.msra.mxu2 %v66_v3  ;;  %v198_v20 = vld [vmem:[#allocation4 + $0x68] sm:$0xff]  ;;  %v197_v21 = vld [vmem:[#allocation4 + $0x60] sm:$0xff]  ;;  %v196_v23 = vld [vmem:[#allocation4 + $0x58] sm:$0xff] }
  0x13   :  { %206 = vmatpush.msra.mxu1 %v199_v19  ;;  %255 = vmatpush.msra.mxu3 %v199_v19  ;;  %v274_v22 = vld [vmem:[%s422_s2] ss:$0 sm:$0xff]  ;;  %v195_v25 = vld [vmem:[#allocation4 + $0x50] sm:$0xff]  ;;  %v194_v27 = vld [vmem:[#allocation4 + $0x48] sm:$0xff] }
  0x14   :  { %78 = vmatpush.msra.mxu0 %v65_v4  ;;  %242 = vmatpush.msra.mxu2 %v65_v4  ;;  %v193_v29 = vld [vmem:[#allocation4 + $0x40] sm:$0xff]  ;;  %v192_v30 = vld [vmem:[#allocation4 + $0x38] sm:$0xff]  ;;  %v191_v33 = vld [vmem:[#allocation4 + $0x30] sm:$0xff] }
  0x15   :  { %207 = vmatpush.msra.mxu1 %v198_v20  ;;  %256 = vmatpush.msra.mxu3 %v198_v20  ;;  %v190_v36 = vld [vmem:[#allocation4 + $0x28] sm:$0xff]  ;;  %v189_v39 = vld [vmem:[#allocation4 + $0x20] sm:$0xff]  ;;  %v188_v43 = vld [vmem:[#allocation4 + $0x18] sm:$0xff] }
  0x16   :  { %79 = vmatpush.msra.mxu0 %v64_v5  ;;  %243 = vmatpush.msra.mxu2 %v64_v5  ;;  %v187_v47 = vld [vmem:[#allocation4 + $0x10] sm:$0xff]  ;;  %v186_v52 = vld [vmem:[#allocation4 + $0x8] sm:$0xff]  ;;  %v185_v56 = vld [vmem:[#allocation4] sm:$0xff] }
  0x17   :  { %208 = vmatpush.msra.mxu1 %v197_v21  ;;  %257 = vmatpush.msra.mxu3 %v197_v21 }
  0x18   :  { %80 = vmatpush.msra.mxu0 %v63_v6  ;;  %244 = vmatpush.msra.mxu2 %v63_v6 }
  0x19   :  { %209 = vmatpush.msra.mxu1 %v196_v23  ;;  %258 = vmatpush.msra.mxu3 %v196_v23 }
  0x1a   :  { %81 = vmatpush.msra.mxu0 %v62_v7  ;;  %245 = vmatpush.msra.mxu2 %v62_v7 }
  0x1b   :  { %210 = vmatpush.msra.mxu1 %v195_v25  ;;  %259 = vmatpush.msra.mxu3 %v195_v25 }
  0x1c   :  { %82 = vmatpush.msra.mxu0 %v61_v8  ;;  %246 = vmatpush.msra.mxu2 %v61_v8 }
  0x1d   :  { %211 = vmatpush.msra.mxu1 %v194_v27  ;;  %260 = vmatpush.msra.mxu3 %v194_v27 }
  0x1e   :  { %83 = vmatpush.msra.mxu0 %v60_v9  ;;  %247 = vmatpush.msra.mxu2 %v60_v9 }
  0x1f   :  { %212 = vmatpush.msra.mxu1 %v193_v29  ;;  %261 = vmatpush.msra.mxu3 %v193_v29 }
  0x20   :  { %84 = vmatpush.msra.mxu0 %v59_v10  ;;  %248 = vmatpush.msra.mxu2 %v59_v10 }
  0x21   :  { %213 = vmatpush.msra.mxu1 %v192_v30  ;;  %262 = vmatpush.msra.mxu3 %v192_v30 }
  0x22   :  { %85 = vmatpush.msra.mxu0 %v58_v11  ;;  %249 = vmatpush.msra.mxu2 %v58_v11 }
  0x23   :  { %214 = vmatpush.msra.mxu1 %v191_v33  ;;  %263 = vmatpush.msra.mxu3 %v191_v33 }
  0x24   :  { %86 = vmatpush.msra.mxu0 %v57_v12  ;;  %250 = vmatpush.msra.mxu2 %v57_v12 }
  0x25   :  { %215 = vmatpush.msra.mxu1 %v190_v36  ;;  %264 = vmatpush.msra.mxu3 %v190_v36 }
  0x26   :  { %87 = vmatpush.msra.mxu0 %v56_v13  ;;  %251 = vmatpush.msra.mxu2 %v56_v13 }
  0x27   :  { %216 = vmatpush.msra.mxu1 %v189_v39  ;;  %265 = vmatpush.msra.mxu3 %v189_v39 }
  0x28   :  { %88 = vmatpush.msra.mxu0 %v55_v14  ;;  %252 = vmatpush.msra.mxu2 %v55_v14 }
  0x29   :  { %217 = vmatpush.msra.mxu1 %v188_v43  ;;  %266 = vmatpush.msra.mxu3 %v188_v43 }
  0x2a   :  { %89 = vmatpush.msra.mxu0 %v54_v15  ;;  %253 = vmatpush.msra.mxu2 %v54_v15 }
  0x2b   :  { %90 = vmatmul.f32.vlgmr.msra.gmra.mxu0 %v52_v16  ;;  %93 = vmatmul.f32.vlgmr.msra.gmra.mxu2 %v53_v17 }
  0x2c   :  { %218 = vmatpush.msra.mxu1 %v187_v47  ;;  %267 = vmatpush.msra.mxu3 %v187_v47 }
  0x2e   :  { %219 = vmatpush.msra.mxu1 %v186_v52  ;;  %268 = vmatpush.msra.mxu3 %v186_v52 }
  0x30   :  { %220 = vmatpush.msra.mxu1 %v185_v56  ;;  %269 = vmatpush.msra.mxu3 %v185_v56  ;;  %v275_v56 = vld [vmem:[%s424_s4] ss:$0 sm:$0xff] }
  0xa8   :  { %v91_v24 = vpop.f32.mrf.mxu0 }
  0xa9   :  { %v381_v26 = vadd.f32 %v274_v22, %v91_v24 }
  0xab   :  { %v384_v28 = vmul.f32 0.70710677, %v381_v26  ;;  %v97_v47 = vmul.f32 0.5, %v381_v26 }
  0xad   :  { %v101_v31 = vmul.f32 %v384_v28, %v384_v28 }
  0xae   :  { %v94_v32 = vpop.f32.mrf.mxu2 }
  0xaf   :  { %v388_v34 = vmin.f32 %v101_v31, 16.0  ;;  %v390_v35 = vadd.f32 %v274_v22, %v94_v32 }
  0xb1   :  { %v103_v37 = vmul.f32 2.1237322e-06, %v388_v34  ;;  %v394_v38 = vmul.f32 0.70710677, %v390_v35  ;;  %v114_v40 = vmul.f32 3.8918573e-05, %v388_v34 }
  0xb3   :  { %v104_v41 = vadd.f32 0.00028619796, %v103_v37  ;;  %v141_v42 = vmul.f32 %v394_v38, %v394_v38  ;;  %v115_v44 = vadd.f32 0.001143296, %v114_v40 }
  0xb5   :  { %v105_v45 = vmul.f32 %v104_v41, %v388_v34  ;;  %v142_v46 = vmin.f32 %v141_v42, 16.0  ;;  %v116_v48 = vmul.f32 %v115_v44, %v388_v34 }
  0xb7   :  { %v143_v49 = vmul.f32 2.1237322e-06, %v142_v46  ;;  %v154_v50 = vmul.f32 3.8918573e-05, %v142_v46  ;;  %v106_v51 = vadd.f32 0.0036580483, %v105_v45 }
  0xb8   :  { %v117_v53 = vadd.f32 0.014752088, %v116_v48 }
  0xb9   :  { %v144_v54 = vadd.f32 0.00028619796, %v143_v49  ;;  %v155_v55 = vadd.f32 0.001143296, %v154_v50  ;;  %v107_v60 = vmul.f32 %v106_v51, %v388_v34 }
  0xba   :  { %v118_v57 = vmul.f32 %v117_v53, %v388_v34  ;;  %v98_v53 = vmul.f32 0.5, %v390_v35 }
  0xbb   :  { %v145_v58 = vmul.f32 %v144_v54, %v142_v46  ;;  %v156_v59 = vmul.f32 %v155_v55, %v142_v46  ;;  %v108_v2 = vadd.f32 0.05243302, %v107_v60 }
  0xbc   :  { %v119_v61 = vadd.f32 0.112945676, %v118_v57 }
  0xbd   :  { %v146_v62 = vadd.f32 0.0036580483, %v145_v58  ;;  %v157_v63 = vadd.f32 0.014752088, %v156_v59  ;;  %v109_v8 = vmul.f32 %v108_v2, %v388_v34 }
  0xbe   :  { %v120_v0 = vmul.f32 %v119_v61, %v388_v34 }
  0xbf   :  { %v158_v1 = vmul.f32 %v157_v63, %v142_v46  ;;  %v147_v4 = vmul.f32 %v146_v62, %v142_v46  ;;  %v110_v13 = vadd.f32 0.18741608, %v109_v8 }
  0xc0   :  { %v121_v3 = vadd.f32 0.4994258, %v120_v0 }
  0xc1   :  { %v159_v5 = vadd.f32 0.112945676, %v158_v1  ;;  %v148_v10 = vadd.f32 0.05243302, %v147_v4  ;;  %v111_v17 = vmul.f32 %v110_v13, %v388_v34 }
  0xc2   :  { %v122_v6 = vmul.f32 %v121_v3, %v388_v34 }
  0xc3   :  { %v160_v7 = vmul.f32 %v159_v5, %v142_v46  ;;  %v149_v14 = vmul.f32 %v148_v10, %v142_v46  ;;  %v112_v21 = vadd.f32 1.1283791, %v111_v17 }
  0xc4   :  { %v123_v9 = vadd.f32 1.0, %v122_v6 }
  0xc5   :  { %v161_v11 = vadd.f32 0.4994258, %v160_v7  ;;  %v150_v18 = vadd.f32 0.18741608, %v149_v14  ;;  %v113_v31 = vmul.f32 %v112_v21, %v384_v28 }
  0xc6   :  { %276 = vrcp.f32 %v123_v9  ;;  %v135_v22 = vand.u32 2147483648, %v123_v9  ;;  %v133_v27 = vand.u32 2147483647, %v123_v9  ;;  %vm129_vm1 = vweird.f32 %v123_v9 }
  0xc7   :  { %v162_v12 = vmul.f32 %v161_v11, %v142_v46  ;;  %v151_v24 = vmul.f32 %v150_v18, %v142_v46 }
  0xc8   :  { %v136_v32 = vor.u32 1.1754944e-38, %v135_v22  ;;  %vm134_vm3 = vcmp.eq.f32.partialorder %v133_v27, 8.507059e+37 }
  0xc9   :  { %v163_v15 = vadd.f32 1.0, %v162_v12  ;;  %v152_v36 = vadd.f32 1.1283791, %v151_v24 }
  0xcb   :  { %278 = vrcp.f32 %v163_v15  ;;  %v175_v37 = vand.u32 2147483648, %v163_v15  ;;  %v173_v41 = vand.u32 2147483647, %v163_v15  ;;  %vm169_vm5 = vweird.f32 %v163_v15 }
  0xcc   :  { %v277_v16 = vpop.eup %276  ;;  %v153_v46 = vmul.f32 %v152_v36, %v394_v38 }
  0xcd   :  { %v125_v19 = vmul.f32 %v277_v16, %v123_v9  ;;  %vm130_vm0 = vweird.f32 %v277_v16  ;;  %v176_v45 = vor.u32 1.1754944e-38, %v175_v37  ;;  %vm174_vm7 = vcmp.eq.f32.partialorder %v173_v41, 8.507059e+37 }
  0xce   :  { %vm131_vm2 = vmor %vm129_vm1, %vm130_vm0 }
  0xcf   :  { %v126_v20 = vsub.f32 1.0, %v125_v19 }
  0xd1   :  { %v279_v23 = vpop.eup %278  ;;  %v127_v25 = vmul.f32 %v277_v16, %v126_v20 }
  0xd2   :  { %v165_v29 = vmul.f32 %v279_v23, %v163_v15  ;;  %vm170_vm4 = vweird.f32 %v279_v23 }
  0xd3   :  { %v128_v30 = vadd.f32 %v277_v16, %v127_v25  ;;  %vm171_vm6 = vmor %vm169_vm5, %vm170_vm4 }
  0xd4   :  { %v166_v33 = vsub.f32 1.0, %v165_v29 }
  0xd5   :  { %v132_v34 = vsel %vm131_vm2, %v277_v16, %v128_v30 }
  0xd6   :  { %v137_v39 = vsel %vm134_vm3, %v136_v32, %v132_v34  ;;  %v167_v40 = vmul.f32 %v279_v23, %v166_v33 }
  0xd7   :  { %v138_v42 = vmul.f32 %v137_v39, %v113_v31 }
  0xd8   :  { %v168_v43 = vadd.f32 %v279_v23, %v167_v40 }
  0xd9   :  { %v236_v44 = vclamps-f32 %v138_v42, 1.0 }
  0xda   :  { %v172_v28 = vsel %vm171_vm6, %v279_v23, %v168_v43 }
  0xdb   :  { %v181_v48 = vadd.f32 1.0, %v236_v44  ;;  %v177_v49 = vsel %vm174_vm7, %v176_v45, %v172_v28 }
  0xdc   :  { %v178_v50 = vmul.f32 %v177_v49, %v153_v46 }
  0xdd   :  { %v183_v51 = vmul.f32 %v181_v48, %v97_v47 }
  0xde   :  { %v237_v52 = vclamps-f32 %v178_v50, 1.0 }
  0xdf   :  { %221 = vmatmul.f32.vlgmr.msra.gmra.mxu1 %v183_v51 }
  0xe0   :  { %v182_v54 = vadd.f32 1.0, %v237_v52 }
  0xe2   :  { %v184_v55 = vmul.f32 %v182_v54, %v98_v53 }
  0xe4   :  { %224 = vmatmul.f32.vlgmr.msra.gmra.mxu3 %v184_v55 }
 0x15c   :  { %v222_v38 = vpop.f32.mrf.mxu1 }
 0x15d   :  { %v223_v57 = vadd.f32 %v275_v56, %v222_v38 }
 0x15f   :  { %228 = vst [vmem:[%s425_s5] sm:$0xff] %v223_v57 }
 0x167   :  { %v225_v26 = vpop.f32.mrf.mxu3 }
 0x168   :  { %v226_v58 = vadd.f32 %v275_v56, %v225_v26 }
 0x16a   :  { %229 = vst [vmem:[%s425_s5 + $0x8] sm:$0xff] %v226_v58 }
 0x16b   :  { %234 = vsyncpa [#allocation3], 1 }
 0x16c   :  { %235 = vsyncpa [#allocation5], 1 }

</bundles_post_ra>
